<compile_context>
chip_gen: v7x
topology: tpu7x:2x2x1
jax: 0.10.0
libtpu: 0.0.40
codegen_flags: <defaults>
</compile_context>

<pallas_src>
import functools

import jax
import jax.numpy as jnp
from jax.experimental import pallas as pl
from jax.experimental.pallas import tpu as pltpu

IN_F = 2
HIDDEN = 64
OUT_F = 2
TB_MAX = 8192  # max batch-tile (lane) width


def _round_up(a, m):
    return ((a + m - 1) // m) * m


def mlp_kernel(w1_ref, w2_ref, w3_ref, x_ref, o_ref):
    """One batch tile; batch rides the lane axis, all three layers on the MXU.

    w1_ref: (65, 3)   [[W1, b1], [0, 0, 1]]
    w2_ref: (65, 65)  [[W2, b2], [0..0, 1]]
    w3_ref: (2, 65)   [W3 | b3]
    x_ref:  (3, TB)   rows: x0, x1, ones
    o_ref:  (2, TB)
    """
    cdt = w1_ref.dtype

    # fc1 + ReLU: (65,3) @ (3,TB).  Row 64 comes out as relu(1) = 1, i.e. the
    # "ones" row is carried forward for free so b2 folds into W2_aug.
    h1 = jnp.maximum(
        jnp.dot(w1_ref[...], x_ref[...], preferred_element_type=jnp.float32),
        0.0)

    # fc2 + ReLU: (65,65) @ (65,TB).  Row 64 is again relu(1) = 1.
    h2 = jnp.maximum(
        jnp.dot(w2_ref[...], h1.astype(cdt), preferred_element_type=jnp.float32),
        0.0)

    # fc3 (+ b3 via the ones row): (2,65) @ (65,TB) -> lane-dense (2,TB) store.
    o_ref[...] = jnp.dot(
        w3_ref[...], h2.astype(cdt), preferred_element_type=jnp.float32
    ).astype(o_ref.dtype)


def build_aug_weights(p, dtype):
    """Bias-folded augmented weight slabs (PyTorch (out,in) layout in)."""
    w1a = jnp.zeros((HIDDEN + 1, IN_F + 1), jnp.float32)
    w1a = w1a.at[:HIDDEN, :IN_F].set(p["w1"].astype(jnp.float32))
    w1a = w1a.at[:HIDDEN, IN_F].set(p["b1"].astype(jnp.float32))
    w1a = w1a.at[HIDDEN, IN_F].set(1.0)

    w2a = jnp.zeros((HIDDEN + 1, HIDDEN + 1), jnp.float32)
    w2a = w2a.at[:HIDDEN, :HIDDEN].set(p["w2"].astype(jnp.float32))
    w2a = w2a.at[:HIDDEN, HIDDEN].set(p["b2"].astype(jnp.float32))
    w2a = w2a.at[HIDDEN, HIDDEN].set(1.0)

    w3a = jnp.zeros((OUT_F, HIDDEN + 1), jnp.float32)
    w3a = w3a.at[:, :HIDDEN].set(p["w3"].astype(jnp.float32))
    w3a = w3a.at[:, HIDDEN].set(p["b3"].astype(jnp.float32))

    return w1a.astype(dtype), w2a.astype(dtype), w3a.astype(dtype)


@functools.partial(jax.jit, static_argnames=("use_bf16", "tb_max"))
def walker_speed_predictor(x, params, *, use_bf16=False, tb_max=TB_MAX):
    """x: (B, 2) float32; params in PyTorch layout (w: (out,in), b: (out,))."""
    B = x.shape[0]
    cdt = jnp.bfloat16 if use_bf16 else jnp.float32

    # Lane-aligned batch tile: as large as possible (<= tb_max, multiple of
    # 256) while keeping >= 2 grid steps when there is enough work, so the
    # "parallel" grid axis can be sharded across v7x's two TensorCores.
    b_al = _round_up(B, 256)
    tb = b_al if b_al <= 256 else min(tb_max, _round_up(b_al // 2, 256))
    b_pad = _round_up(b_al, tb)
    n_steps = b_pad // tb

    # (3, b_pad): transposed input with a ones row appended (bias trick),
    # zero-padded on the lane axis.  Padded lanes never cross a reduction and
    # their outputs are sliced away, so garbage there would be harmless.
    x_t = jnp.concatenate([x.T.astype(cdt), jnp.ones((1, B), cdt)], axis=0)
    x_t = jnp.pad(x_t, ((0, 0), (0, b_pad - B)))

    w1a, w2a, w3a = build_aug_weights(params, cdt)

    flops = 2 * b_pad * ((IN_F + 1) * (HIDDEN + 1)
                         + (HIDDEN + 1) * (HIDDEN + 1)
                         + (HIDDEN + 1) * OUT_F)
    bytes_accessed = (x_t.size * x_t.dtype.itemsize
                      + w1a.size * w1a.dtype.itemsize
                      + w2a.size * w2a.dtype.itemsize
                      + w3a.size * w3a.dtype.itemsize
                      + b_pad * OUT_F * 4)

    out_t = pl.pallas_call(
        mlp_kernel,
        out_shape=jax.ShapeDtypeStruct((OUT_F, b_pad), jnp.float32),
        grid=(n_steps,),
        in_specs=[
            # Constant index_maps: weights DMA'd once, VMEM-resident.
            pl.BlockSpec((HIDDEN + 1, IN_F + 1), lambda i: (0, 0)),
            pl.BlockSpec((HIDDEN + 1, HIDDEN + 1), lambda i: (0, 0)),
            pl.BlockSpec((OUT_F, HIDDEN + 1), lambda i: (0, 0)),
            # Lane-dense batch tile.
            pl.BlockSpec((IN_F + 1, tb), lambda i: (0, i)),
        ],
        out_specs=pl.BlockSpec((OUT_F, tb), lambda i: (0, i)),
        compiler_params=pltpu.CompilerParams(
            dimension_semantics=("parallel",)),
        cost_estimate=pl.CostEstimate(
            flops=flops, transcendentals=0, bytes_accessed=bytes_accessed),
    )(w1a, w2a, w3a, x_t)

    return out_t[:, :B].T


def init_params(key):
    """Deterministic init mimicking PyTorch Linear (uniform +/- 1/sqrt(fan_in)),
    stored in PyTorch layout: w (out_features, in_features), b (out_features,)."""
    def linear(key, fan_in, fan_out):
        kw, kb = jax.random.split(key)
        bound = 1.0 / (fan_in ** 0.5)
        w = jax.random.uniform(kw, (fan_out, fan_in), jnp.float32, -bound, bound)
        b = jax.random.uniform(kb, (fan_out,), jnp.float32, -bound, bound)
        return w, b

    k1, k2, k3 = jax.random.split(key, 3)
    w1, b1 = linear(k1, IN_F, HIDDEN)
    w2, b2 = linear(k2, HIDDEN, HIDDEN)
    w3, b3 = linear(k3, HIDDEN, OUT_F)
    return {"w1": w1, "b1": b1, "w2": w2, "b2": b2, "w3": w3, "b3": b3}


def reference_forward(x, p):
    h1 = jnp.maximum(x @ p["w1"].T + p["b1"], 0.0)
    h2 = jnp.maximum(h1 @ p["w2"].T + p["b2"], 0.0)
    return h2 @ p["w3"].T + p["b3"]


if __name__ == "__main__":
    key = jax.random.PRNGKey(0)
    kx, kp = jax.random.split(key)

    params = init_params(kp)

    # Small demo batch (single grid step).
    batch = 8
    x = jax.random.normal(kx, (batch, IN_F), dtype=jnp.float32)
    out = jax.block_until_ready(walker_speed_predictor(x, params))
    ref = reference_forward(x, params)
    assert out.shape == (batch, OUT_F)
    assert jnp.allclose(out, ref, atol=1e-4, rtol=1e-4)

    # Ragged batch exercises the multi-step ("parallel") grid + padding path.
    x2 = jax.random.normal(kx, (1111, IN_F), dtype=jnp.float32)
    out2 = jax.block_until_ready(walker_speed_predictor(x2, params))
    ref2 = reference_forward(x2, params)
    assert out2.shape == (1111, OUT_F)
    assert jnp.allclose(out2, ref2, atol=1e-4, rtol=1e-4)

    # Optional bf16-operand path (f32 MXU accumulation) — looser tolerance.
    out_bf = jax.block_until_ready(
        walker_speed_predictor(x2, params, use_bf16=True))
    assert out_bf.shape == (1111, OUT_F)
    assert jnp.allclose(out_bf, ref2, atol=7e-2, rtol=5e-2)

    print("KERNEL_OK")
</pallas_src>

<mosaic_0001>
module attributes {stable_mosaic.version = 11 : i64} {
  func.func @mlp_kernel(%arg0: i32, %arg1: memref<65x3xf32, #tpu.memory_space<vmem>>, %arg2: memref<65x65xf32, #tpu.memory_space<vmem>>, %arg3: memref<2x65xf32, #tpu.memory_space<vmem>>, %arg4: memref<3x256xf32, #tpu.memory_space<vmem>>, %arg5: memref<2x256xf32, #tpu.memory_space<vmem>>) attributes {dimension_semantics = [#tpu.dimension_semantics<parallel>], iteration_bounds = array<i64: 1>, scalar_prefetch = 0 : i64, scratch_operands = 0 : i64, tpu.core_type = #tpu.core_type<tc>, window_params = [{pipeline_mode = #tpu.pipeline_mode<synchronous>, transform_indices = @transform_0, window_bounds = array<i64: 65, 3>}, {pipeline_mode = #tpu.pipeline_mode<synchronous>, transform_indices = @transform_1, window_bounds = array<i64: 65, 65>}, {pipeline_mode = #tpu.pipeline_mode<synchronous>, transform_indices = @transform_2, window_bounds = array<i64: 2, 65>}, {transform_indices = @transform_3, window_bounds = array<i64: 3, 256>}, {transform_indices = @transform_4, window_bounds = array<i64: 2, 256>}]} {
    %c0 = arith.constant 0 : index
    %c0_0 = arith.constant 0 : index
    %0 = vector.load %arg1[%c0, %c0_0] : memref<65x3xf32, #tpu.memory_space<vmem>>, vector<65x3xf32>
    %c0_1 = arith.constant 0 : index
    %c0_2 = arith.constant 0 : index
    %1 = vector.load %arg4[%c0_1, %c0_2] : memref<3x256xf32, #tpu.memory_space<vmem>>, vector<3x256xf32>
    %cst = arith.constant dense<0.000000e+00> : vector<65x256xf32>
    %2 = tpu.matmul %0, %1, %cst {dimension_numbers = #tpu.dot_dimension_numbers<[1], [0], [0], [1], [0, 0, 1, 1], [], []>} : vector<65x3xf32>, vector<3x256xf32>, vector<65x256xf32> -> vector<65x256xf32>
    %cst_3 = arith.constant 0.000000e+00 : f32
    %3 = vector.broadcast %cst_3 : f32 to vector<65x256xf32>
    %4 = arith.maximumf %2, %3 : vector<65x256xf32>
    %c0_4 = arith.constant 0 : index
    %c0_5 = arith.constant 0 : index
    %5 = vector.load %arg2[%c0_4, %c0_5] : memref<65x65xf32, #tpu.memory_space<vmem>>, vector<65x65xf32>
    %cst_6 = arith.constant dense<0.000000e+00> : vector<65x256xf32>
    %6 = tpu.matmul %5, %4, %cst_6 {dimension_numbers = #tpu.dot_dimension_numbers<[1], [0], [0], [1], [0, 0, 1, 1], [], []>} : vector<65x65xf32>, vector<65x256xf32>, vector<65x256xf32> -> vector<65x256xf32>
    %cst_7 = arith.constant 0.000000e+00 : f32
    %7 = vector.broadcast %cst_7 : f32 to vector<65x256xf32>
    %8 = arith.maximumf %6, %7 : vector<65x256xf32>
    %c0_8 = arith.constant 0 : index
    %c0_9 = arith.constant 0 : index
    %9 = vector.load %arg3[%c0_8, %c0_9] : memref<2x65xf32, #tpu.memory_space<vmem>>, vector<2x65xf32>
    %cst_10 = arith.constant dense<0.000000e+00> : vector<2x256xf32>
    %10 = tpu.matmul %9, %8, %cst_10 {dimension_numbers = #tpu.dot_dimension_numbers<[1], [0], [0], [1], [0, 0, 1, 1], [], []>} : vector<2x65xf32>, vector<65x256xf32>, vector<2x256xf32> -> vector<2x256xf32>
    %c0_11 = arith.constant 0 : index
    %c0_12 = arith.constant 0 : index
    %11 = vector.load %arg5[%c0_11, %c0_12] : memref<2x256xf32, #tpu.memory_space<vmem>>, vector<2x256xf32>
    tpu.vector_store %arg5[%c0_11, %c0_12], %10 {strides = array<i32>} : memref<2x256xf32, #tpu.memory_space<vmem>>, vector<2x256xf32>,
    return
  }
  func.func @transform_0(%arg0: i32) -> (i32, i32) {
    %c0_i32 = arith.constant 0 : i32
    %c0_i32_0 = arith.constant 0 : i32
    %c0_i32_1 = arith.constant 0 : i32
    return %c0_i32, %c0_i32_0 : i32, i32
  }
  func.func @transform_1(%arg0: i32) -> (i32, i32) {
    %c0_i32 = arith.constant 0 : i32
    %c0_i32_0 = arith.constant 0 : i32
    %c0_i32_1 = arith.constant 0 : i32
    return %c0_i32, %c0_i32_0 : i32, i32
  }
  func.func @transform_2(%arg0: i32) -> (i32, i32) {
    %c0_i32 = arith.constant 0 : i32
    %c0_i32_0 = arith.constant 0 : i32
    %c0_i32_1 = arith.constant 0 : i32
    return %c0_i32, %c0_i32_0 : i32, i32
  }
  func.func @transform_3(%arg0: i32) -> (i32, i32) {
    %c0_i32 = arith.constant 0 : i32
    %c0_i32_0 = arith.constant 0 : i32
    return %c0_i32, %arg0 : i32, i32
  }
  func.func @transform_4(%arg0: i32) -> (i32, i32) {
    %c0_i32 = arith.constant 0 : i32
    %c0_i32_0 = arith.constant 0 : i32
    return %c0_i32, %arg0 : i32, i32
  }
}

</mosaic_0001>

<bundles_post_ra>
// kernel: walker_speed_predictor.1
= control target key start
LH: loop header
LB: loop body
LE: loop exit
PB: predicated region body
PF: predicated region fallthrough
CT: control target
= control target key end

     0   :  { %vm57_vm0 = vcmask 1042432   ;;  %v537_v1 = vmov 0.0   ;;  %vm29_vm1 = vcmask 23552   ;;  %vm236_vm2 = vcmask 1040384   ;;  %s668_s3 = inlined_call_operand.vmem [shape: f32[3,256], index: 3, kind: input, shape index: {}]   ;;  %s669_s0 = inlined_call_operand.vmem [shape: f32[65,3], index: 0, kind: input, shape index: {}]   ;;  %s670_s1 = inlined_call_operand.vmem [shape: f32[65,65], index: 1, kind: input, shape index: {}]   ;;  %s671_s2 = inlined_call_operand.vmem [shape: f32[2,65], index: 2, kind: input, shape index: {}]   ;;  %s672_s4 = inlined_call_operand.vmem [shape: f32[2,256], index: 4, kind: output, shape index: {}]  }
   0x1   :  { %v26_v0 = vld [vmem:[%s668_s3] sm:$0x77]  ;;  %126 = vmatprep.mubr.f32.mxu0 %v537_v1  ;;  %307 = vmatprep.mubr.f32.mxu1 %v537_v1  ;;  %v18_v4 = vld [vmem:[%s669_s0 + $0x8] sm:$0xff]  ;;  %v19_v5 = vld [vmem:[%s669_s0 + $0x10] sm:$0xff]  ;;  %vm208_vm3 = vcmask 531456  }
   0x2   :  { %v28_v2 = vcombine.high %v26_v0, %v26_v0  ;;  %v17_v3 = vld [vmem:[%s669_s0] sm:$0xff]  ;;  %v20_v6 = vld [vmem:[%s669_s0 + $0x18] sm:$0xff]  ;;  %v22_v8 = vld [vmem:[%s669_s0 + $0x28] sm:$0xff] }
   0x3   :  { %v21_v7 = vld [vmem:[%s669_s0 + $0x20] sm:$0xff]  ;;  %v23_v9 = vld [vmem:[%s669_s0 + $0x30] sm:$0xff]  ;;  %v24_v10 = vld [vmem:[%s669_s0 + $0x38] sm:$0xff] }
   0x4   :  { %477 = vmatprep.subr.msk.mxu0 %vm57_vm0, %v28_v2  ;;  %v25_v11 = vld [vmem:[%s669_s0 + $0x40] sm:$0x1]  ;;  %v200_v57 = vld [vmem:[%s670_s1 + $0x8] sm:$0xff]  ;;  %v201_v58 = vld [vmem:[%s670_s1 + $0x10] sm:$0xff] }
   0x5   :  { %478 = vmatpush1.msk.msra.mxu0 %vm57_vm0, %v26_v0  ;;  %v199_v56 = vld [vmem:[%s670_s1] sm:$0xff]  ;;  %v202_v59 = vld [vmem:[%s670_s1 + $0x18] sm:$0xff]  ;;  %v204_v61 = vld [vmem:[%s670_s1 + $0x28] sm:$0xff] }
   0x6   :  { %479 = vmatmul.mubr.msk.f32.vlgmr.msra.gmra.mrb[0].mxu0 %vm29_vm1, %v17_v3  ;;  %v203_v60 = vld [vmem:[%s670_s1 + $0x20] sm:$0xff]  ;;  %v205_v62 = vld [vmem:[%s670_s1 + $0x30] sm:$0xff]  ;;  %v206_v63 = vld [vmem:[%s670_s1 + $0x38] sm:$0xff] }
   0x7   :  { %132 = vmatprep.mubr.f32.mxu0 %v537_v1  ;;  %v207_v0 = vld [vmem:[%s670_s1 + $0x40] sm:$0x1] }
   0xa   :  { %480 = vmatmul.mubr.msk.f32.gmra.mrb[2].mxu0 %vm29_vm1, %v18_v4 }
   0xb   :  { %138 = vmatprep.mubr.f32.mxu0 %v537_v1 }
   0xe   :  { %481 = vmatmul.mubr.msk.f32.gmra.mrb[4].mxu0 %vm29_vm1, %v19_v5 }
   0xf   :  { %144 = vmatprep.mubr.f32.mxu0 %v537_v1 }
  0x12   :  { %482 = vmatmul.mubr.msk.f32.gmra.mrb[6].mxu0 %vm29_vm1, %v20_v6 }
  0x13   :  { %150 = vmatprep.mubr.f32.mxu0 %v537_v1 }
  0x16   :  { %483 = vmatmul.mubr.msk.f32.gmra.mrb[8].mxu0 %vm29_vm1, %v21_v7 }
  0x17   :  { %156 = vmatprep.mubr.f32.mxu0 %v537_v1 }
  0x1a   :  { %484 = vmatmul.mubr.msk.f32.gmra.mrb[10].mxu0 %vm29_vm1, %v22_v8 }
  0x1b   :  { %162 = vmatprep.mubr.f32.mxu0 %v537_v1 }
  0x1e   :  { %485 = vmatmul.mubr.msk.f32.gmra.mrb[12].mxu0 %vm29_vm1, %v23_v9 }
  0x1f   :  { %168 = vmatprep.mubr.f32.mxu0 %v537_v1 }
  0x22   :  { %486 = vmatmul.mubr.msk.f32.gmra.mrb[14].mxu0 %vm29_vm1, %v24_v10 }
  0x23   :  { %174 = vmatprep.mubr.f32.mxu0 %v537_v1 }
  0x26   :  { %487 = vmatmul.mubr.msk.f32.gmra.mrb[16].mxu0 %vm29_vm1, %v25_v11 }
  0x27   :  { %454 = vmatprep.mubr.f32.mxu0 %v537_v1 }
  0xd9   :  { %v128_v12 = vpop.f32.mrb[0].mxu0 }
  0xda   :  { %v130_v13 = vpop.f32.mrb[1].mxu0  ;;  %v181_v15 = vmax.f32 %v128_v12, 0.0 }
  0xdb   :  { %v182_v18 = vmax.f32 %v130_v13, 0.0 }
  0xdd   :  { %v134_v14 = vpop.f32.mrb[2].mxu0 }
  0xde   :  { %v183_v16 = vmax.f32 %v134_v14, 0.0  ;;  %v136_v17 = vpop.f32.mrb[3].mxu0 }
  0xdf   :  { %v184_v19 = vmax.f32 %v136_v17, 0.0 }
  0xe0   :  { %v505_v20 = vpack.c.bf16 %v183_v16, %v181_v15 }
  0xe1   :  { %v140_v21 = vpop.f32.mrb[4].mxu0  ;;  %v503_v22 = vpack.c.bf16 %v184_v19, %v182_v18 }
  0xe2   :  { %v142_v23 = vpop.f32.mrb[5].mxu0  ;;  %v185_v25 = vmax.f32 %v140_v21, 0.0 }
  0xe3   :  { %504 = vmatprep.subr.bf16.mxu1 %v503_v22  ;;  %v186_v28 = vmax.f32 %v142_v23, 0.0 }
  0xe4   :  { %506 = vmatpush1.bf16.msra.mxu1 %v505_v20 }
  0xe5   :  { %v146_v24 = vpop.f32.mrb[6].mxu0 }
  0xe6   :  { %v187_v26 = vmax.f32 %v146_v24, 0.0  ;;  %v148_v27 = vpop.f32.mrb[7].mxu0 }
  0xe7   :  { %v188_v29 = vmax.f32 %v148_v27, 0.0 }
  0xe8   :  { %v509_v30 = vpack.c.bf16 %v187_v26, %v185_v25 }
  0xe9   :  { %v507_v31 = vpack.c.bf16 %v188_v29, %v186_v28  ;;  %v152_v32 = vpop.f32.mrb[8].mxu0 }
  0xea   :  { %v154_v33 = vpop.f32.mrb[9].mxu0  ;;  %v189_v35 = vmax.f32 %v152_v32, 0.0 }
  0xeb   :  { %508 = vmatprep.subr.bf16.mxu1 %v507_v31  ;;  %v190_v38 = vmax.f32 %v154_v33, 0.0 }
  0xec   :  { %510 = vmatpush1.bf16.msra.mxu1 %v509_v30 }
  0xed   :  { %v158_v34 = vpop.f32.mrb[10].mxu0 }
  0xee   :  { %v191_v36 = vmax.f32 %v158_v34, 0.0  ;;  %v160_v37 = vpop.f32.mrb[11].mxu0 }
  0xef   :  { %v192_v39 = vmax.f32 %v160_v37, 0.0 }
  0xf0   :  { %v513_v40 = vpack.c.bf16 %v191_v36, %v189_v35 }
  0xf1   :  { %v511_v41 = vpack.c.bf16 %v192_v39, %v190_v38  ;;  %v164_v42 = vpop.f32.mrb[12].mxu0 }
  0xf2   :  { %v166_v43 = vpop.f32.mrb[13].mxu0  ;;  %v193_v45 = vmax.f32 %v164_v42, 0.0 }
  0xf3   :  { %512 = vmatprep.subr.bf16.mxu1 %v511_v41  ;;  %v194_v48 = vmax.f32 %v166_v43, 0.0 }
  0xf4   :  { %514 = vmatpush1.bf16.msra.mxu1 %v513_v40 }
  0xf5   :  { %v170_v44 = vpop.f32.mrb[14].mxu0 }
  0xf6   :  { %v195_v46 = vmax.f32 %v170_v44, 0.0  ;;  %v172_v47 = vpop.f32.mrb[15].mxu0 }
  0xf7   :  { %v196_v49 = vmax.f32 %v172_v47, 0.0 }
  0xf8   :  { %v517_v50 = vpack.c.bf16 %v195_v46, %v193_v45  ;;  %v380_v45 = vld [vmem:[%s671_s2] sm:$0x3] }
  0xf9   :  { %v515_v51 = vpack.c.bf16 %v196_v49, %v194_v48  ;;  %v176_v52 = vpop.f32.mrb[16].mxu0 }
  0xfa   :  { %v178_v53 = vpop.f32.mrb[17].mxu0  ;;  %v197_v55 = vmax.f32 %v176_v52, 0.0 }
  0xfb   :  { %v198_v54 = vmax.f32 %v178_v53, 0.0  ;;  %516 = vmatprep.subr.bf16.mxu1 %v515_v51 }
  0xfc   :  { %518 = vmatpush1.bf16.msra.mxu1 %v517_v50 }
  0xfd   :  { %488 = vmatprep.subr.msk.mxu1 %vm236_vm2, %v198_v54 }
 0x100   :  { %489 = vmatpush1.msk.msra.mxu1 %vm236_vm2, %v197_v55 }
 0x101   :  { %490 = vmatmul.mubr.msk.f32.vlgmr.msra.gmra.mrb[0].mxu1 %vm208_vm3, %v199_v56 }
 0x102   :  { %313 = vmatprep.mubr.f32.mxu1 %v537_v1 }
 0x105   :  { %491 = vmatmul.mubr.msk.f32.gmra.mrb[2].mxu1 %vm208_vm3, %v200_v57 }
 0x106   :  { %319 = vmatprep.mubr.f32.mxu1 %v537_v1 }
 0x109   :  { %492 = vmatmul.mubr.msk.f32.gmra.mrb[4].mxu1 %vm208_vm3, %v201_v58 }
 0x10a   :  { %325 = vmatprep.mubr.f32.mxu1 %v537_v1 }
 0x10d   :  { %493 = vmatmul.mubr.msk.f32.gmra.mrb[6].mxu1 %vm208_vm3, %v202_v59 }
 0x10e   :  { %331 = vmatprep.mubr.f32.mxu1 %v537_v1 }
 0x111   :  { %494 = vmatmul.mubr.msk.f32.gmra.mrb[8].mxu1 %vm208_vm3, %v203_v60 }
 0x112   :  { %337 = vmatprep.mubr.f32.mxu1 %v537_v1 }
 0x115   :  { %495 = vmatmul.mubr.msk.f32.gmra.mrb[10].mxu1 %vm208_vm3, %v204_v61 }
 0x116   :  { %343 = vmatprep.mubr.f32.mxu1 %v537_v1 }
 0x119   :  { %496 = vmatmul.mubr.msk.f32.gmra.mrb[12].mxu1 %vm208_vm3, %v205_v62 }
 0x11a   :  { %349 = vmatprep.mubr.f32.mxu1 %v537_v1 }
 0x11d   :  { %497 = vmatmul.mubr.msk.f32.gmra.mrb[14].mxu1 %vm208_vm3, %v206_v63 }
 0x11e   :  { %355 = vmatprep.mubr.f32.mxu1 %v537_v1 }
 0x121   :  { %498 = vmatmul.mubr.msk.f32.gmra.mrb[16].mxu1 %vm208_vm3, %v207_v0 }
 0x1d4   :  { %v309_v2 = vpop.f32.mrb[0].mxu1 }
 0x1d5   :  { %v311_v3 = vpop.f32.mrb[1].mxu1  ;;  %v362_v5 = vmax.f32 %v309_v2, 0.0 }
 0x1d6   :  { %v363_v8 = vmax.f32 %v311_v3, 0.0 }
 0x1d8   :  { %v315_v4 = vpop.f32.mrb[2].mxu1 }
 0x1d9   :  { %v364_v6 = vmax.f32 %v315_v4, 0.0  ;;  %v317_v7 = vpop.f32.mrb[3].mxu1 }
 0x1da   :  { %v365_v9 = vmax.f32 %v317_v7, 0.0 }
 0x1db   :  { %v521_v10 = vpack.c.bf16 %v364_v6, %v362_v5 }
 0x1dc   :  { %v519_v11 = vpack.c.bf16 %v365_v9, %v363_v8  ;;  %v321_v12 = vpop.f32.mrb[4].mxu1 }
 0x1dd   :  { %v323_v13 = vpop.f32.mrb[5].mxu1  ;;  %v366_v14 = vmax.f32 %v321_v12, 0.0 }
 0x1de   :  { %520 = vmatprep.subr.bf16.mxu0 %v519_v11  ;;  %v367_v17 = vmax.f32 %v323_v13, 0.0 }
 0x1df   :  { %522 = vmatpush1.bf16.msra.mxu0 %v521_v10 }
 0x1e0   :  { %v327_v1 = vpop.f32.mrb[6].mxu1 }
 0x1e1   :  { %v368_v15 = vmax.f32 %v327_v1, 0.0  ;;  %v329_v16 = vpop.f32.mrb[7].mxu1 }
 0x1e2   :  { %v369_v18 = vmax.f32 %v329_v16, 0.0 }
 0x1e3   :  { %v525_v19 = vpack.c.bf16 %v368_v15, %v366_v14 }
 0x1e4   :  { %v523_v20 = vpack.c.bf16 %v369_v18, %v367_v17  ;;  %v333_v21 = vpop.f32.mrb[8].mxu1 }
 0x1e5   :  { %v335_v22 = vpop.f32.mrb[9].mxu1  ;;  %v370_v24 = vmax.f32 %v333_v21, 0.0 }
 0x1e6   :  { %524 = vmatprep.subr.bf16.mxu0 %v523_v20  ;;  %v371_v27 = vmax.f32 %v335_v22, 0.0 }
 0x1e7   :  { %526 = vmatpush1.bf16.msra.mxu0 %v525_v19 }
 0x1e8   :  { %v339_v23 = vpop.f32.mrb[10].mxu1 }
 0x1e9   :  { %v372_v25 = vmax.f32 %v339_v23, 0.0  ;;  %v341_v26 = vpop.f32.mrb[11].mxu1 }
 0x1ea   :  { %v373_v28 = vmax.f32 %v341_v26, 0.0 }
 0x1eb   :  { %v529_v29 = vpack.c.bf16 %v372_v25, %v370_v24 }
 0x1ec   :  { %v527_v30 = vpack.c.bf16 %v373_v28, %v371_v27  ;;  %v345_v31 = vpop.f32.mrb[12].mxu1 }
 0x1ed   :  { %v347_v32 = vpop.f32.mrb[13].mxu1  ;;  %v374_v34 = vmax.f32 %v345_v31, 0.0 }
 0x1ee   :  { %528 = vmatprep.subr.bf16.mxu0 %v527_v30  ;;  %v375_v37 = vmax.f32 %v347_v32, 0.0 }
 0x1ef   :  { %530 = vmatpush1.bf16.msra.mxu0 %v529_v29 }
 0x1f0   :  { %v351_v33 = vpop.f32.mrb[14].mxu1 }
 0x1f1   :  { %v376_v35 = vmax.f32 %v351_v33, 0.0  ;;  %v353_v36 = vpop.f32.mrb[15].mxu1 }
 0x1f2   :  { %v377_v38 = vmax.f32 %v353_v36, 0.0 }
 0x1f3   :  { %v533_v39 = vpack.c.bf16 %v376_v35, %v374_v34 }
 0x1f4   :  { %v531_v40 = vpack.c.bf16 %v377_v38, %v375_v37  ;;  %v357_v41 = vpop.f32.mrb[16].mxu1 }
 0x1f5   :  { %v359_v42 = vpop.f32.mrb[17].mxu1  ;;  %v378_v44 = vmax.f32 %v357_v41, 0.0 }
 0x1f6   :  { %532 = vmatprep.subr.bf16.mxu0 %v531_v40  ;;  %v379_v43 = vmax.f32 %v359_v42, 0.0 }
 0x1f7   :  { %534 = vmatpush1.bf16.msra.mxu0 %v533_v39 }
 0x1f8   :  { %499 = vmatprep.subr.msk.mxu0 %vm236_vm2, %v379_v43 }
 0x1fb   :  { %500 = vmatpush1.msk.msra.mxu0 %vm236_vm2, %v378_v44 }
 0x1fc   :  { %501 = vmatmul.mubr.msk.f32.vlgmr.msra.gmra.mrb[18].mxu0 %vm208_vm3, %v380_v45 }
 0x2cf   :  { %v456_v46 = vpop.f32.mrb[18].mxu0 }
 0x2d0   :  { %v458_v47 = vpop.f32.mrb[19].mxu0 }
 0x2d1   :  { %v463_v48 = vcombine.low %v456_v46, %v458_v47 }
 0x2d3   :  { %502 = vst.sshfl [vmem:[%s672_s4] sm:$0x33 pattern:$0x76325410] %v463_v48 }

</bundles_post_ra>
